<compile_context>
chip_gen: v7x
topology: tpu7x:2x2x1
jax: 0.10.0
libtpu: 0.0.40
codegen_flags: <defaults>
</compile_context>

<pallas_src>
import functools
import numpy as np
import jax
import jax.numpy as jnp
from jax.experimental import pallas as pl
from jax.experimental.pallas import tpu as pltpu

EST_PARAMS = 4   # D, f, Dp, f0 estimators (4 parallel MLP encoders)
DEPTH = 2        # net_params.depth default (fused packing below assumes depth == 2)
BN_EPS = 1e-5

# ParamBounds defaults: D=(0,0.005), f=(0,0.7), Dp=(0.005,0.2), f0=(0,2.0)
BOUNDS = {
    "D":  (0.0, 0.005),
    "f":  (0.0, 0.7),
    "Dp": (0.005, 0.2),
    "f0": (0.0, 2.0),
}


def _round_up(x, m):
    return (x + m - 1) // m * m


def _ivim_fused_kernel(x_ref, bv_ref, w1_ref, b1_ref, w2_ref, b2_ref, wh_ref, bh_ref,
                       xsig_ref, par_ref, *, bounds):
    """Fused 4-encoder IVIM forward on one (TILE, W) row tile.

    x_ref : (T, W)     bf16   input signal tile
    bv_ref: (1, W)     f32    b-values
    w1_ref: (W, 4W)    bf16   layer-1 weights, 4 encoders concatenated (BN folded)
    b1_ref: (1, 4W)    f32    layer-1 bias (BN folded)
    w2_ref: (4W, 4W)   bf16   layer-2 block-diagonal weights (BN folded)
    b2_ref: (1, 4W)    f32    layer-2 bias (BN folded)
    wh_ref: (4W, 4)    bf16   4 final Linear(width,1) heads as one block matrix
    bh_ref: (1, 4)     f32    head biases
    xsig_ref: (T, W)   f32    reconstructed IVIM signal
    par_ref : (T, 4)   f32    columns = [Dt, Fp/(f0+Fp), Dp, f0+Fp]
    """
    x = x_ref[...]
    bv = bv_ref[...]

    # Layer 1: all 4 encoders in one MXU pass (BN folded; dropout == identity).
    h = jnp.dot(x, w1_ref[...], preferred_element_type=jnp.float32) + b1_ref[...]
    h = jnp.maximum(h, 0.0)
    # Layer 2: block-diagonal fused matmul.
    h = jnp.dot(h.astype(jnp.bfloat16), w2_ref[...],
                preferred_element_type=jnp.float32) + b2_ref[...]
    h = jnp.maximum(h, 0.0)
    # Heads: 4x Linear(width, 1) as a single (4W, 4) dot.
    raw = jnp.dot(h.astype(jnp.bfloat16), wh_ref[...],
                  preferred_element_type=jnp.float32) + bh_ref[...]        # (T, 4)

    sig = jax.nn.sigmoid(raw)
    f_lo, f_hi = bounds["f"]
    dp_lo, dp_hi = bounds["Dp"]
    d_lo, d_hi = bounds["D"]
    f0_lo, f0_hi = bounds["f0"]
    Fp = f_lo + sig[:, 0:1] * (f_hi - f_lo)      # encoder 0
    Dp = dp_lo + sig[:, 1:2] * (dp_hi - dp_lo)   # encoder 1
    Dt = d_lo + sig[:, 2:3] * (d_hi - d_lo)      # encoder 2
    f0 = f0_lo + sig[:, 3:4] * (f0_hi - f0_lo)   # encoder 3

    # X = Fp * exp(-b * Dp) + f0 * exp(-b * Dt)
    xsig_ref[...] = Fp * jnp.exp(-bv * Dp) + f0 * jnp.exp(-bv * Dt)

    ff = f0 + Fp
    par_ref[:, 0:1] = Dt
    par_ref[:, 1:2] = Fp / ff
    par_ref[:, 2:3] = Dp
    par_ref[:, 3:4] = ff


def init_params(key, width):
    """Deterministic synthetic parameters in the original per-encoder PyTorch layout."""
    ks = jax.random.split(key, 4)
    limit = 1.0 / np.sqrt(width)
    # Linear weights stored pre-transposed as (in, out).
    w = jax.random.uniform(ks[0], (EST_PARAMS, DEPTH, width, width), jnp.float32, -limit, limit)
    b = jax.random.uniform(ks[1], (EST_PARAMS, DEPTH, 1, width), jnp.float32, -limit, limit)
    # BatchNorm1d defaults (eval mode): gamma=1, beta=0, running_mean=0, running_var=1.
    gamma = jnp.ones((EST_PARAMS, DEPTH, 1, width), jnp.float32)
    beta = jnp.zeros((EST_PARAMS, DEPTH, 1, width), jnp.float32)
    run_mean = jnp.zeros((EST_PARAMS, DEPTH, 1, width), jnp.float32)
    run_var = jnp.ones((EST_PARAMS, DEPTH, 1, width), jnp.float32)
    wo = jax.random.uniform(ks[2], (EST_PARAMS, 1, width), jnp.float32, -limit, limit)
    bo = jax.random.uniform(ks[3], (EST_PARAMS, 1, 1), jnp.float32, -limit, limit)
    return dict(w=w, b=b, gamma=gamma, beta=beta, run_mean=run_mean,
                run_var=run_var, wo=wo, bo=bo)


def pack_params(params):
    """Fold eval-mode BatchNorm into the Linears and fuse the 4 encoders into block matrices."""
    w, b = params["w"], params["b"]
    E, D_, W, _ = w.shape
    assert D_ == 2, "fused packing assumes net_params.depth == 2 (the default)"
    s = params["gamma"] / jnp.sqrt(params["run_var"] + BN_EPS)   # (E, D, 1, W)
    t = params["beta"] - params["run_mean"] * s
    wf = w * s          # scale output features -> BN folded into Linear weight
    bf = b * s + t      # BN folded into Linear bias

    # Layer 1: concatenate the 4 encoders on the output dim -> (W, 4W).
    w1 = jnp.concatenate([wf[e, 0] for e in range(E)], axis=1).astype(jnp.bfloat16)
    b1 = jnp.concatenate([bf[e, 0] for e in range(E)], axis=1)

    # Layer 2: block-diagonal (4W, 4W).
    w2 = jnp.zeros((E * W, E * W), jnp.float32)
    for e in range(E):
        w2 = w2.at[e * W:(e + 1) * W, e * W:(e + 1) * W].set(wf[e, 1])
    w2 = w2.astype(jnp.bfloat16)
    b2 = jnp.concatenate([bf[e, 1] for e in range(E)], axis=1)

    # Heads: 4x Linear(width, 1) as one (4W, 4) block matrix.
    wh = jnp.zeros((E * W, E), jnp.float32)
    for e in range(E):
        wh = wh.at[e * W:(e + 1) * W, e].set(params["wo"][e, 0])
    wh = wh.astype(jnp.bfloat16)
    bh = params["bo"].reshape(1, E)

    return dict(w1=w1, b1=b1, w2=w2, b2=b2, wh=wh, bh=bh)


def net_forward(X, bvalues, params, bayes_samples, *, tile_rows=512):
    batch, width = X.shape
    packed = pack_params(params)
    bv = bvalues.reshape(1, width).astype(jnp.float32)

    # BernoulliDropout is identity in this deterministic eval-mode port, so every
    # bayes replica is identical: compute the forward once and replicate outputs.
    # TODO(synk): per-replica stochastic MC-dropout (Bernoulli masks) not reproduced.
    n = batch
    tile = min(tile_rows, _round_up(n, 16))
    n_pad = _round_up(n, tile)
    x = X.astype(jnp.bfloat16)
    if n_pad != n:
        x = jnp.pad(x, ((0, n_pad - n), (0, 0)))

    fw = EST_PARAMS * width
    kernel = functools.partial(_ivim_fused_kernel, bounds=BOUNDS)
    const = lambda i: (0, 0)   # weights stay VMEM-resident across the row grid
    row = lambda i: (i, 0)

    xsig, par = pl.pallas_call(
        kernel,
        grid=(n_pad // tile,),
        in_specs=[
            pl.BlockSpec((tile, width), row),        # x tile
            pl.BlockSpec((1, width), const),         # b-values
            pl.BlockSpec((width, fw), const),        # w1
            pl.BlockSpec((1, fw), const),            # b1
            pl.BlockSpec((fw, fw), const),           # w2 (block-diagonal)
            pl.BlockSpec((1, fw), const),            # b2
            pl.BlockSpec((fw, EST_PARAMS), const),   # head weights
            pl.BlockSpec((1, EST_PARAMS), const),    # head biases
        ],
        out_specs=(
            pl.BlockSpec((tile, width), row),        # reconstructed signal
            pl.BlockSpec((tile, EST_PARAMS), row),   # consolidated [Dt, Fpr, Dp, FF]
        ),
        out_shape=(
            jax.ShapeDtypeStruct((n_pad, width), jnp.float32),
            jax.ShapeDtypeStruct((n_pad, EST_PARAMS), jnp.float32),
        ),
        compiler_params=pltpu.CompilerParams(
            dimension_semantics=("parallel",)),
    )(x, bv, packed["w1"], packed["b1"], packed["w2"], packed["b2"],
      packed["wh"], packed["bh"])

    xsig = xsig[:n]
    par = par[:n]
    rep = lambda a: jnp.broadcast_to(a[None], (bayes_samples, batch, a.shape[-1]))
    # matches PyTorch return: (X, Dt, Fp/(f0+Fp), Dp, f0+Fp)
    return (rep(xsig), rep(par[:, 0:1]), rep(par[:, 1:2]),
            rep(par[:, 2:3]), rep(par[:, 3:4]))


def net_forward_ref(X, bvalues, params, bayes_samples):
    """Pure-JAX per-encoder reference (eval-mode BN, identity dropout, bf16 matmul inputs)."""
    batch, width = X.shape
    bv = bvalues.reshape(1, width).astype(jnp.float32)
    s = params["gamma"] / jnp.sqrt(params["run_var"] + BN_EPS)
    t = params["beta"] - params["run_mean"] * s
    raw = []
    for e in range(EST_PARAMS):
        h = X.astype(jnp.float32)
        for d in range(DEPTH):
            wf = (params["w"][e, d] * s[e, d]).astype(jnp.bfloat16)
            bf = params["b"][e, d] * s[e, d] + t[e, d]
            h = jnp.dot(h.astype(jnp.bfloat16), wf,
                        preferred_element_type=jnp.float32) + bf
            h = jnp.maximum(h, 0.0)
        wo = params["wo"][e, 0].reshape(width, 1).astype(jnp.bfloat16)
        raw.append(jnp.dot(h.astype(jnp.bfloat16), wo,
                           preferred_element_type=jnp.float32) + params["bo"][e])
    sigm = lambda p, k: BOUNDS[k][0] + jax.nn.sigmoid(p) * (BOUNDS[k][1] - BOUNDS[k][0])
    Fp, Dp, Dt, f0 = sigm(raw[0], "f"), sigm(raw[1], "Dp"), sigm(raw[2], "D"), sigm(raw[3], "f0")
    Xsig = Fp * jnp.exp(-bv * Dp) + f0 * jnp.exp(-bv * Dt)
    rep = lambda a: jnp.broadcast_to(a[None], (bayes_samples, batch, a.shape[-1]))
    return (rep(Xsig), rep(Dt), rep(Fp / (f0 + Fp)), rep(Dp), rep(f0 + Fp))


if __name__ == "__main__":
    batch, bayes_samples = 8, 4
    key = jax.random.PRNGKey(0)
    k_x, k_p = jax.random.split(key)

    # 16 IVIM b-values (s/mm^2); width = len(bvalues) = 16
    bvalues = jnp.array([0., 5., 10., 20., 30., 40., 60., 100., 150., 200.,
                         300., 400., 500., 600., 700., 800.], dtype=jnp.float32)
    width = int(bvalues.shape[0])
    X = jax.random.uniform(k_x, (batch, width), jnp.float32, 0.2, 1.2)
    params = init_params(k_p, width)

    outs = net_forward(X, bvalues, params, bayes_samples)
    outs = jax.block_until_ready(outs)

    ref = net_forward_ref(X, bvalues, params, bayes_samples)
    for o, r in zip(outs, ref):
        np.testing.assert_allclose(np.asarray(o), np.asarray(r), rtol=2e-3, atol=2e-3)

    print("KERNEL_OK")
</pallas_src>

<mosaic_0001>
module attributes {stable_mosaic.version = 11 : i64} {
  func.func @_ivim_fused_kernel(%arg0: i32, %arg1: memref<16x16xbf16, #tpu.memory_space<vmem>>, %arg2: memref<1x16xf32, #tpu.memory_space<vmem>>, %arg3: memref<16x64xbf16, #tpu.memory_space<vmem>>, %arg4: memref<1x64xf32, #tpu.memory_space<vmem>>, %arg5: memref<64x64xbf16, #tpu.memory_space<vmem>>, %arg6: memref<1x64xf32, #tpu.memory_space<vmem>>, %arg7: memref<64x4xbf16, #tpu.memory_space<vmem>>, %arg8: memref<1x4xf32, #tpu.memory_space<vmem>>, %arg9: memref<16x16xf32, #tpu.memory_space<vmem>>, %arg10: memref<16x4xf32, #tpu.memory_space<vmem>>) attributes {dimension_semantics = [#tpu.dimension_semantics<parallel>], iteration_bounds = array<i64: 1>, scalar_prefetch = 0 : i64, scratch_operands = 0 : i64, tpu.core_type = #tpu.core_type<tc>, window_params = [{transform_indices = @transform_0, window_bounds = array<i64: 16, 16>}, {pipeline_mode = #tpu.pipeline_mode<synchronous>, transform_indices = @transform_1, window_bounds = array<i64: 1, 16>}, {pipeline_mode = #tpu.pipeline_mode<synchronous>, transform_indices = @transform_2, window_bounds = array<i64: 16, 64>}, {pipeline_mode = #tpu.pipeline_mode<synchronous>, transform_indices = @transform_3, window_bounds = array<i64: 1, 64>}, {pipeline_mode = #tpu.pipeline_mode<synchronous>, transform_indices = @transform_4, window_bounds = array<i64: 64, 64>}, {pipeline_mode = #tpu.pipeline_mode<synchronous>, transform_indices = @transform_5, window_bounds = array<i64: 1, 64>}, {pipeline_mode = #tpu.pipeline_mode<synchronous>, transform_indices = @transform_6, window_bounds = array<i64: 64, 4>}, {pipeline_mode = #tpu.pipeline_mode<synchronous>, transform_indices = @transform_7, window_bounds = array<i64: 1, 4>}, {transform_indices = @transform_8, window_bounds = array<i64: 16, 16>}, {transform_indices = @transform_9, window_bounds = array<i64: 16, 4>}]} {
    %c0 = arith.constant 0 : index
    %c0_0 = arith.constant 0 : index
    %0 = vector.load %arg1[%c0, %c0_0] : memref<16x16xbf16, #tpu.memory_space<vmem>>, vector<16x16xbf16>
    %c0_1 = arith.constant 0 : index
    %c0_2 = arith.constant 0 : index
    %1 = vector.load %arg2[%c0_1, %c0_2] : memref<1x16xf32, #tpu.memory_space<vmem>>, vector<1x16xf32>
    %c0_3 = arith.constant 0 : index
    %c0_4 = arith.constant 0 : index
    %2 = vector.load %arg3[%c0_3, %c0_4] : memref<16x64xbf16, #tpu.memory_space<vmem>>, vector<16x64xbf16>
    %cst = arith.constant dense<0.000000e+00> : vector<16x64xf32>
    %3 = tpu.matmul %0, %2, %cst {dimension_numbers = #tpu.dot_dimension_numbers<[1], [0], [0], [1], [0, 0, 1, 1], [], []>} : vector<16x16xbf16>, vector<16x64xbf16>, vector<16x64xf32> -> vector<16x64xf32>
    %c0_5 = arith.constant 0 : index
    %c0_6 = arith.constant 0 : index
    %4 = vector.load %arg4[%c0_5, %c0_6] : memref<1x64xf32, #tpu.memory_space<vmem>>, vector<1x64xf32>
    %5 = vector.broadcast %4 : vector<1x64xf32> to vector<16x64xf32>
    %6 = arith.addf %3, %5 : vector<16x64xf32>
    %cst_7 = arith.constant 0.000000e+00 : f32
    %7 = vector.broadcast %cst_7 : f32 to vector<16x64xf32>
    %8 = arith.maximumf %6, %7 : vector<16x64xf32>
    %9 = arith.truncf %8 : vector<16x64xf32> to vector<16x64xbf16>
    %c0_8 = arith.constant 0 : index
    %c0_9 = arith.constant 0 : index
    %10 = vector.load %arg5[%c0_8, %c0_9] : memref<64x64xbf16, #tpu.memory_space<vmem>>, vector<64x64xbf16>
    %cst_10 = arith.constant dense<0.000000e+00> : vector<16x64xf32>
    %11 = tpu.matmul %9, %10, %cst_10 {dimension_numbers = #tpu.dot_dimension_numbers<[1], [0], [0], [1], [0, 0, 1, 1], [], []>} : vector<16x64xbf16>, vector<64x64xbf16>, vector<16x64xf32> -> vector<16x64xf32>
    %c0_11 = arith.constant 0 : index
    %c0_12 = arith.constant 0 : index
    %12 = vector.load %arg6[%c0_11, %c0_12] : memref<1x64xf32, #tpu.memory_space<vmem>>, vector<1x64xf32>
    %13 = vector.broadcast %12 : vector<1x64xf32> to vector<16x64xf32>
    %14 = arith.addf %11, %13 : vector<16x64xf32>
    %cst_13 = arith.constant 0.000000e+00 : f32
    %15 = vector.broadcast %cst_13 : f32 to vector<16x64xf32>
    %16 = arith.maximumf %14, %15 : vector<16x64xf32>
    %17 = arith.truncf %16 : vector<16x64xf32> to vector<16x64xbf16>
    %c0_14 = arith.constant 0 : index
    %c0_15 = arith.constant 0 : index
    %18 = vector.load %arg7[%c0_14, %c0_15] : memref<64x4xbf16, #tpu.memory_space<vmem>>, vector<64x4xbf16>
    %cst_16 = arith.constant dense<0.000000e+00> : vector<16x4xf32>
    %19 = tpu.matmul %17, %18, %cst_16 {dimension_numbers = #tpu.dot_dimension_numbers<[1], [0], [0], [1], [0, 0, 1, 1], [], []>} : vector<16x64xbf16>, vector<64x4xbf16>, vector<16x4xf32> -> vector<16x4xf32>
    %c0_17 = arith.constant 0 : index
    %c0_18 = arith.constant 0 : index
    %20 = vector.load %arg8[%c0_17, %c0_18] : memref<1x4xf32, #tpu.memory_space<vmem>>, vector<1x4xf32>
    %21 = vector.broadcast %20 : vector<1x4xf32> to vector<16x4xf32>
    %22 = arith.addf %19, %21 : vector<16x4xf32>
    %23 = arith.negf %22 : vector<16x4xf32>
    %24 = math.exp %23 : vector<16x4xf32>
    %cst_19 = arith.constant 1.000000e+00 : f32
    %25 = vector.broadcast %cst_19 : f32 to vector<16x4xf32>
    %26 = arith.addf %25, %24 : vector<16x4xf32>
    %27 = arith.divf %25, %26 : vector<16x4xf32>
    %28 = vector.extract_strided_slice %27 {offsets = [0, 0], sizes = [16, 1], strides = [1, 1]} : vector<16x4xf32> to vector<16x1xf32>
    %cst_20 = arith.constant 0.699999988 : f32
    %29 = vector.broadcast %cst_20 : f32 to vector<16x1xf32>
    %30 = arith.mulf %28, %29 : vector<16x1xf32>
    %cst_21 = arith.constant 0.000000e+00 : f32
    %31 = vector.broadcast %cst_21 : f32 to vector<16x1xf32>
    %32 = arith.addf %31, %30 : vector<16x1xf32>
    %33 = vector.extract_strided_slice %27 {offsets = [0, 1], sizes = [16, 1], strides = [1, 1]} : vector<16x4xf32> to vector<16x1xf32>
    %cst_22 = arith.constant 1.950000e-01 : f32
    %34 = vector.broadcast %cst_22 : f32 to vector<16x1xf32>
    %35 = arith.mulf %33, %34 : vector<16x1xf32>
    %cst_23 = arith.constant 5.000000e-03 : f32
    %36 = vector.broadcast %cst_23 : f32 to vector<16x1xf32>
    %37 = arith.addf %36, %35 : vector<16x1xf32>
    %38 = vector.extract_strided_slice %27 {offsets = [0, 2], sizes = [16, 1], strides = [1, 1]} : vector<16x4xf32> to vector<16x1xf32>
    %cst_24 = arith.constant 5.000000e-03 : f32
    %39 = vector.broadcast %cst_24 : f32 to vector<16x1xf32>
    %40 = arith.mulf %38, %39 : vector<16x1xf32>
    %cst_25 = arith.constant 0.000000e+00 : f32
    %41 = vector.broadcast %cst_25 : f32 to vector<16x1xf32>
    %42 = arith.addf %41, %40 : vector<16x1xf32>
    %43 = vector.extract_strided_slice %27 {offsets = [0, 3], sizes = [16, 1], strides = [1, 1]} : vector<16x4xf32> to vector<16x1xf32>
    %cst_26 = arith.constant 2.000000e+00 : f32
    %44 = vector.broadcast %cst_26 : f32 to vector<16x1xf32>
    %45 = arith.mulf %43, %44 : vector<16x1xf32>
    %cst_27 = arith.constant 0.000000e+00 : f32
    %46 = vector.broadcast %cst_27 : f32 to vector<16x1xf32>
    %47 = arith.addf %46, %45 : vector<16x1xf32>
    %cst_28 = arith.constant 0.000000e+00 : f32
    %48 = vector.broadcast %cst_28 : f32 to vector<1x16xf32>
    %49 = arith.subf %48, %1 : vector<1x16xf32>
    %50 = vector.broadcast %49 : vector<1x16xf32> to vector<16x16xf32>
    %51 = vector.broadcast %37 : vector<16x1xf32> to vector<16x16xf32>
    %52 = arith.mulf %50, %51 : vector<16x16xf32>
    %53 = math.exp %52 : vector<16x16xf32>
    %54 = vector.broadcast %32 : vector<16x1xf32> to vector<16x16xf32>
    %55 = arith.mulf %54, %53 : vector<16x16xf32>
    %cst_29 = arith.constant 0.000000e+00 : f32
    %56 = vector.broadcast %cst_29 : f32 to vector<1x16xf32>
    %57 = arith.subf %56, %1 : vector<1x16xf32>
    %58 = vector.broadcast %57 : vector<1x16xf32> to vector<16x16xf32>
    %59 = vector.broadcast %42 : vector<16x1xf32> to vector<16x16xf32>
    %60 = arith.mulf %58, %59 : vector<16x16xf32>
    %61 = math.exp %60 : vector<16x16xf32>
    %62 = vector.broadcast %47 : vector<16x1xf32> to vector<16x16xf32>
    %63 = arith.mulf %62, %61 : vector<16x16xf32>
    %64 = arith.addf %55, %63 : vector<16x16xf32>
    %c0_30 = arith.constant 0 : index
    %c0_31 = arith.constant 0 : index
    %65 = vector.load %arg9[%c0_30, %c0_31] : memref<16x16xf32, #tpu.memory_space<vmem>>, vector<16x16xf32>
    tpu.vector_store %arg9[%c0_30, %c0_31], %64 {strides = array<i32>} : memref<16x16xf32, #tpu.memory_space<vmem>>, vector<16x16xf32>,
    %66 = arith.addf %47, %32 : vector<16x1xf32>
    %c0_32 = arith.constant 0 : index
    %c0_33 = arith.constant 0 : index
    %67 = vector.load %arg10[%c0_32, %c0_33] : memref<16x4xf32, #tpu.memory_space<vmem>>, vector<16x1xf32>
    tpu.vector_store %arg10[%c0_32, %c0_33], %42 {strides = array<i32>} : memref<16x4xf32, #tpu.memory_space<vmem>>, vector<16x1xf32>,
    %68 = arith.divf %32, %66 : vector<16x1xf32>
    %c0_34 = arith.constant 0 : index
    %c1 = arith.constant 1 : index
    %69 = vector.load %arg10[%c0_34, %c1] : memref<16x4xf32, #tpu.memory_space<vmem>>, vector<16x1xf32>
    tpu.vector_store %arg10[%c0_34, %c1], %68 {strides = array<i32>} : memref<16x4xf32, #tpu.memory_space<vmem>>, vector<16x1xf32>,
    %c0_35 = arith.constant 0 : index
    %c2 = arith.constant 2 : index
    %70 = vector.load %arg10[%c0_35, %c2] : memref<16x4xf32, #tpu.memory_space<vmem>>, vector<16x1xf32>
    tpu.vector_store %arg10[%c0_35, %c2], %37 {strides = array<i32>} : memref<16x4xf32, #tpu.memory_space<vmem>>, vector<16x1xf32>,
    %c0_36 = arith.constant 0 : index
    %c3 = arith.constant 3 : index
    %71 = vector.load %arg10[%c0_36, %c3] : memref<16x4xf32, #tpu.memory_space<vmem>>, vector<16x1xf32>
    tpu.vector_store %arg10[%c0_36, %c3], %66 {strides = array<i32>} : memref<16x4xf32, #tpu.memory_space<vmem>>, vector<16x1xf32>,
    return
  }
  func.func @transform_0(%arg0: i32) -> (i32, i32) {
    %c0_i32 = arith.constant 0 : i32
    %c0_i32_0 = arith.constant 0 : i32
    return %arg0, %c0_i32 : i32, i32
  }
  func.func @transform_1(%arg0: i32) -> (i32, i32) {
    %c0_i32 = arith.constant 0 : i32
    %c0_i32_0 = arith.constant 0 : i32
    %c0_i32_1 = arith.constant 0 : i32
    return %c0_i32, %c0_i32_0 : i32, i32
  }
  func.func @transform_2(%arg0: i32) -> (i32, i32) {
    %c0_i32 = arith.constant 0 : i32
    %c0_i32_0 = arith.constant 0 : i32
    %c0_i32_1 = arith.constant 0 : i32
    return %c0_i32, %c0_i32_0 : i32, i32
  }
  func.func @transform_3(%arg0: i32) -> (i32, i32) {
    %c0_i32 = arith.constant 0 : i32
    %c0_i32_0 = arith.constant 0 : i32
    %c0_i32_1 = arith.constant 0 : i32
    return %c0_i32, %c0_i32_0 : i32, i32
  }
  func.func @transform_4(%arg0: i32) -> (i32, i32) {
    %c0_i32 = arith.constant 0 : i32
    %c0_i32_0 = arith.constant 0 : i32
    %c0_i32_1 = arith.constant 0 : i32
    return %c0_i32, %c0_i32_0 : i32, i32
  }
  func.func @transform_5(%arg0: i32) -> (i32, i32) {
    %c0_i32 = arith.constant 0 : i32
    %c0_i32_0 = arith.constant 0 : i32
    %c0_i32_1 = arith.constant 0 : i32
    return %c0_i32, %c0_i32_0 : i32, i32
  }
  func.func @transform_6(%arg0: i32) -> (i32, i32) {
    %c0_i32 = arith.constant 0 : i32
    %c0_i32_0 = arith.constant 0 : i32
    %c0_i32_1 = arith.constant 0 : i32
    return %c0_i32, %c0_i32_0 : i32, i32
  }
  func.func @transform_7(%arg0: i32) -> (i32, i32) {
    %c0_i32 = arith.constant 0 : i32
    %c0_i32_0 = arith.constant 0 : i32
    %c0_i32_1 = arith.constant 0 : i32
    return %c0_i32, %c0_i32_0 : i32, i32
  }
  func.func @transform_8(%arg0: i32) -> (i32, i32) {
    %c0_i32 = arith.constant 0 : i32
    %c0_i32_0 = arith.constant 0 : i32
    return %arg0, %c0_i32 : i32, i32
  }
  func.func @transform_9(%arg0: i32) -> (i32, i32) {
    %c0_i32 = arith.constant 0 : i32
    %c0_i32_0 = arith.constant 0 : i32
    return %arg0, %c0_i32 : i32, i32
  }
}

</mosaic_0001>

<bundles_post_ra>
// kernel: tpu_custom_call.1
= control target key start
LH: loop header
LB: loop body
LE: loop exit
PB: predicated region body
PF: predicated region fallthrough
CT: control target
= control target key end

     0   :  { %15 = vsyncpa [#allocation3], 0  ;;  %s779_s0 = inlined_call_operand.vmem [shape: bf16[16,16], index: 0, kind: input, shape index: {}]   ;;  %s780_s1 = inlined_call_operand.vmem [shape: f32[1,16], index: 1, kind: input, shape index: {}]   ;;  %s781_s2 = inlined_call_operand.vmem [shape: bf16[16,64], index: 2, kind: input, shape index: {}]   ;;  %s782_s3 = inlined_call_operand.hbm [shape: f32[1,64], index: 3, kind: input, shape index: {}]   ;;  %s783_s4 = inlined_call_operand.vmem [shape: bf16[64,64], index: 4, kind: input, shape index: {}]   ;;  %s784_s5 = inlined_call_operand.vmem [shape: f32[1,64], index: 5, kind: input, shape index: {}]   ;;  %s785_s6 = inlined_call_operand.vmem [shape: bf16[64,4], index: 6, kind: input, shape index: {}]   ;;  %s786_s7 = inlined_call_operand.vmem [shape: f32[1,4], index: 7, kind: input, shape index: {}]   ;;  %s787_s8 = inlined_call_operand.hbm [shape: f32[16,16], index: 8, kind: output, shape index: {0}]   ;;  %s788_s9 = inlined_call_operand.vmem [shape: f32[16,4], index: 9, kind: output, shape index: {1}]  }
   0x1   :  { %16 = vsyncpa [#allocation4], 0  ;;  %s613_s30 = smov [#allocation2]   ;;  %s565_s13 = scalar_lea.hbm %s782_s3, 16 }
   0x2   :  { %s29_s10 = sshll.u32 %s613_s30, 4  ;;  %p566_p0 = scmp.ne.s32.totalorder %s782_s3, %s565_s13  ;;  %s30_s10 = int_to_ptr.vmem [resolvable:$true] %s29_s10 }
   0x3   :  { %p569_p1 = scmp.lt.u32.totalorder %s565_s13, %s782_s3 }
   0x5   :  { %p571_p2 = pnand %p569_p1, %p566_p0 }
   0x7   :  { %574 = shalt.err (!%p571_p2)
}
   0x8   :  { %s575_s18 = scalar_lea.vmem %s30_s10, 16  ;;  %s579_s19 = scalar_lea.vmem %s30_s10, 32 }
   0x9   :  { %p576_p3 = scmp.ne.s32.totalorder %s30_s10, %s575_s18  ;;  %p580_p4 = scmp.lt.s32.totalorder %s30_s10, %s30_s10 }
   0xa   :  { %p581_p5 = scmp.lt.s32.totalorder %s579_s19, %s575_s18 }
   0xc   :  { %p582_p6 = por %p581_p5, %p580_p4 }
   0xe   :  { %p583_p7 = pnand %p582_p6, %p576_p3 }
  0x10   :  { %586 = shalt.err (!%p583_p7)
}
  0x11   :  { %32 = dma.hbm_to_vmem [thread:$0]  %s782_s3, 16, %s30_s10, [#allocation3]  }
  0x12   :  { %609 = dma.done.wait [#allocation3], 16  }
  0x13   :  { %610 = vsyncadd [#allocation3], 4294967280  ;;  %v614_v0 = vmov 0.0   ;;  %vm615_vm0 = vmmov 0   ;;  %v535_v1 = vld [vmem:[%s781_s2] sm:$0xff]   ;;  %vm68_vm1 = vcmask 130048  }
  0x14   :  { %484 = vmatprep.subr.bf16.mxu0 %v614_v0  ;;  %486 = vmatprep.mubr.msk.bf16.mxu0 %vm615_vm0, %v614_v0  ;;  %v536_v2 = vld [vmem:[%s779_s0] sm:$0xff]   ;;  %v538_v4 = vld [vmem:[%s783_s4 + $0x8] sm:$0xff]   ;;  %v539_v5 = vld [vmem:[%s783_s4 + $0x10] sm:$0xff]   ;;  %vm155_vm2 = vcmask 523264   ;;  %v616_v31 = vmov 1   ;;  %v618_v52 = vmov 2  }
  0x15   :  { %490 = vmatprep.subr.bf16.mxu1 %v614_v0  ;;  %498 = vmatprep.mubr.msk.bf16.mxu1 %vm615_vm0, %v614_v0  ;;  %v537_v3 = vld [vmem:[%s783_s4] sm:$0xff]   ;;  %v540_v6 = vld [vmem:[%s783_s4 + $0x18] sm:$0xff]   ;;  %v542_v8 = vld [vmem:[%s785_s6 + $0x8] sm:$0xff]   ;;  %v619_v54 = vmov 3   ;;  %s621_s20 = smov 125   ;;  %v622_v63 = vmov 0  }
  0x16   :  { %485 = vmatpush3.bf16.msra.mxu0 %v535_v1  ;;  %491 = vmatpush3.bf16.msra.mxu1 %v537_v3  ;;  %v541_v7 = vld [vmem:[%s785_s6] sm:$0xff]   ;;  %v543_v19 = vld [vmem:[%s785_s6 + $0x10] sm:$0xff]   ;;  %v544_v20 = vld [vmem:[%s785_s6 + $0x18] sm:$0xff]   ;;  %vm395_vm3 = vcmask 7168   ;;  %s623_s25 = smov 1  }
  0x17   :  { %502 = vmatprep.subr.bf16.mxu0 %v614_v0  ;;  %492 = vmatprep.subr.bf16.mxu1 %v614_v0  ;;  %v454_v9 = vld [vmem:[#allocation2] ss:$0 sm:$0xff] }
  0x18   :  { %v458_v21 = vld [vmem:[%s784_s5] ss:$0 sm:$0xff]  ;;  %528 = vset.pattern.permute.xlu0 %v616_v31  ;;  %529 = vset.pattern.permute.xlu1 %v616_v31  ;;  %s617_s5 = smov 3  }
  0x19   :  { %487 = vmatmul.mubr.msk.bf16.vlgmr.msra.gmra.mrb[0].mxu0 %vm68_vm1, %v536_v2  ;;  %v464_v32 = vld [vmem:[%s786_s7] ss:$0 sm:$0xff]  ;;  %s620_s7 = smov 126  }
  0x1a   :  { %510 = vmatprep.mubr.msk.bf16.mxu0 %vm615_vm0, %v614_v0  ;;  %493 = vmatpush3.bf16.msra.mxu1 %v538_v4 }
  0x1b   :  { %494 = vmatprep.subr.bf16.mxu1 %v614_v0  ;;  %503 = vmatpush3.bf16.msra.mxu0 %v541_v7 }
  0x1c   :  { %504 = vmatprep.subr.bf16.mxu0 %v614_v0 }
  0x1e   :  { %495 = vmatpush3.bf16.msra.mxu1 %v539_v5 }
  0x1f   :  { %496 = vmatprep.subr.bf16.mxu1 %v614_v0  ;;  %505 = vmatpush3.bf16.msra.mxu0 %v542_v8  ;;  %v47_v8 = vld [vmem:[%s780_s1] sm:$0x1]  ;;  %s624_s1 = smov [#allocation5]  }
  0x20   :  { %506 = vmatprep.subr.bf16.mxu0 %v614_v0  ;;  %s438_s26 = sshll.u32 %s624_s1, 4  ;;  %s439_s26 = int_to_ptr.vmem [resolvable:$true] %s438_s26 }
  0x21   :  { %s587_s28 = scalar_lea.vmem %s439_s26, 256  ;;  %p592_p9 = scmp.lt.s32.totalorder %s439_s26, %s439_s26 }
  0x22   :  { %497 = vmatpush3.bf16.msra.mxu1 %v540_v6  ;;  %v316_v6 = vlaneseq  ;;  %p588_p8 = scmp.ne.s32.totalorder %s439_s26, %s587_s28  ;;  %p593_p10 = scmp.lt.s32.totalorder %s587_s28, %s587_s28 }
  0x23   :  { %507 = vmatpush3.bf16.msra.mxu0 %v543_v19 }
  0x24   :  { %508 = vmatprep.subr.bf16.mxu0 %v614_v0  ;;  %v317_v7 = vshrl.u32 %v316_v6, 7  ;;  %p594_p11 = por %p593_p10, %p592_p9 }
  0x26   :  { %p595_p12 = pnand %p594_p11, %p588_p8 }
  0x27   :  { %509 = vmatpush3.bf16.msra.mxu0 %v544_v20 }
  0xec   :  { %v106_v10 = vpop.f32.mrb[0].mxu0 }
  0xed   :  { %v107_v11 = vadd.f32 %v454_v9, %v106_v10  ;;  %v488_v12 = vpop.f32.mrb[1].mxu0 }
  0xee   :  { %v109_v13 = vpop.f32.mrb[2].mxu0  ;;  %v318_v12 = vsub.s32 0, %v317_v7 }
  0xef   :  { %v110_v14 = vadd.f32 %v454_v9, %v109_v13  ;;  %v489_v15 = vpop.f32.mrb[3].mxu0  ;;  %v113_v16 = vmax.f32 %v107_v11, 0.0  ;;  %v314_v11 = vsub.f32 0.0, %v47_v8 }
  0xf1   :  { %v114_v17 = vmax.f32 %v110_v14, 0.0  ;;  %v319_v15 = vrot.slane %v314_v11, %v318_v12 }
  0xf3   :  { %v115_v18 = vpack.c.bf16 %v114_v17, %v113_v16 }
  0xf5   :  { %499 = vmatmul.mubr.msk.bf16.vlgmr.msra.gmra.mrb[0].mxu1 %vm155_vm2, %v115_v18 }
 0x1c8   :  { %v193_v22 = vpop.f32.mrb[0].mxu1 }
 0x1c9   :  { %v194_v23 = vadd.f32 %v458_v21, %v193_v22  ;;  %v500_v24 = vpop.f32.mrb[1].mxu1 }
 0x1ca   :  { %v196_v25 = vpop.f32.mrb[2].mxu1 }
 0x1cb   :  { %v197_v26 = vadd.f32 %v458_v21, %v196_v25  ;;  %v501_v27 = vpop.f32.mrb[3].mxu1  ;;  %v200_v28 = vmax.f32 %v194_v23, 0.0 }
 0x1cd   :  { %v201_v29 = vmax.f32 %v197_v26, 0.0 }
 0x1cf   :  { %v202_v30 = vpack.c.bf16 %v201_v29, %v200_v28 }
 0x1d1   :  { %511 = vmatmul.mubr.msk.bf16.vlgmr.msra.gmra.mrb[4].mxu0 %vm155_vm2, %v202_v30 }
 0x2a4   :  { %v279_v33 = vpop.f32.mrb[4].mxu0 }
 0x2a5   :  { %v280_v34 = vadd.f32 %v464_v32, %v279_v33  ;;  %v512_v35 = vpop.f32.mrb[5].mxu0 }
 0x2a6   :  { %v282_v36 = vpop.f32.mrb[6].mxu0 }
 0x2a7   :  { %v470_v37 = vmul.f32 -1.442695, %v280_v34  ;;  %v283_v38 = vadd.f32 %v464_v32, %v282_v36  ;;  %v513_v39 = vpop.f32.mrb[7].mxu0 }
 0x2a9   :  { %545 = vpow2.f32 %v470_v37  ;;  %v471_v40 = vmul.f32 -1.442695, %v283_v38 }
 0x2ab   :  { %547 = vpow2.f32 %v471_v40 }
 0x2b3   :  { %v546_v41 = vpop.eup %545 }
 0x2b4   :  { %v292_v42 = vadd.f32 1.0, %v546_v41 }
 0x2b5   :  { %v548_v43 = vpop.eup %547 }
 0x2b6   :  { %549 = vrcp.f32 %v292_v42  ;;  %v293_v44 = vadd.f32 1.0, %v548_v43 }
 0x2b8   :  { %551 = vrcp.f32 %v293_v44 }
 0x2c0   :  { %v550_v45 = vpop.eup %549 }
 0x2c1   :  { %v298_v46 = vmul.f32 0.7, %v550_v45  ;;  %v302_v49 = vmul.f32 0.195, %v550_v45  ;;  %v310_v53 = vmul.f32 2.0, %v550_v45 }
 0x2c2   :  { %v552_v47 = vpop.eup %551  ;;  %v306_v62 = vmul.f32 0.005, %v550_v45 }
 0x2c3   :  { %381 = vrot.lane.b32.xlu0 %v298_v46, %s617_s5  ;;  %v299_v48 = vmul.f32 0.7, %v552_v47  ;;  %v304_v50 = vadd.f32 0.005, %v302_v49  ;;  %v307_v51 = vmul.f32 0.005, %v552_v47 }
 0x2c4   :  { %v311_v57 = vmul.f32 2.0, %v552_v47  ;;  %v303_v60 = vmul.f32 0.195, %v552_v47 }
 0x2c6   :  { %v305_v61 = vadd.f32 0.005, %v303_v60 }
 0x2c7   :  { %383 = vrot.lane.b32.xlu0 %v299_v48, %s617_s5 }
 0x2cb   :  { %323 = vperm.xlu0 %528, %v304_v50  }
 0x2cf   :  { %531 = vset.pattern.permute.xlu0 %v618_v52 }
 0x2d0   :  { %356 = vperm.xlu0 %531, %v307_v51  }
 0x2d4   :  { %533 = vset.pattern.permute.xlu0 %v619_v54 }
 0x2d5   :  { %367 = vperm.xlu0 %533, %v310_v53  }
 0x2d9   :  { %391 = vrot.lane.b32.xlu0 %v307_v51, %s620_s7 }
 0x335   :  { %v382_v55 = vpop.permute.xlu0 %381 }
 0x336   :  { %v728_v56 = vadd.f32 %v382_v55, %v310_v53 }
 0x338   :  { %400 = vrot.lane.b32.xlu1 %v728_v56, %s621_s20 }
 0x339   :  { %v384_v58 = vpop.permute.xlu0 %383 }
 0x33a   :  { %v731_v59 = vadd.f32 %v384_v58, %v311_v57 }
 0x33c   :  { %402 = vrot.lane.b32.xlu1 %v731_v59, %s621_s20 }
 0x340   :  { %328 = vperm.xlu1 %529, %v305_v61  }
 0x344   :  { %530 = vset.pattern.permute.xlu1 %v618_v52 }
 0x345   :  { %351 = vperm.xlu1 %530, %v306_v62  }
 0x349   :  { %532 = vset.pattern.permute.xlu1 %v622_v63 }
 0x34a   :  { %339 = vperm.xlu1 %532, %v298_v46   ;;  %v324_v0 = vpop.permute.xlu0 %323 }
 0x34b   :  { %v331_v16 = vmul.f32 %v324_v0, %v319_v15 }
 0x34d   :  { %v333_v21 = vmul.f32 1.442695, %v331_v16 }
 0x34e   :  { %344 = vperm.xlu1 %532, %v299_v48  }
 0x34f   :  { %v357_v1 = vpop.permute.xlu0 %356 }
 0x350   :  { %v360_v18 = vmul.f32 %v357_v1, %v319_v15 }
 0x352   :  { %534 = vset.pattern.permute.xlu1 %v619_v54  ;;  %v363_v22 = vmul.f32 1.442695, %v360_v18 }
 0x353   :  { %372 = vperm.xlu1 %534, %v311_v57  }
 0x354   :  { %v368_v2 = vpop.permute.xlu0 %367 }
 0x357   :  { %389 = vrot.lane.b32.xlu1 %v306_v62, %s620_s7 }
 0x358   :  { %v392_v3 = vpop.permute.xlu0 %391 }
 0x359   :  { %397 = vst.msk [vmem:[%s788_s9 + $0x8] sm:$0xff] %vm395_vm3, %v392_v3 }
 0x3aa   :  { %v401_v4 = vpop.permute.xlu1 %400 }
 0x3ab   :  { %553 = vrcp.f32 %v401_v4 }
 0x3ae   :  { %v403_v5 = vpop.permute.xlu1 %402 }
 0x3af   :  { %555 = vrcp.f32 %v403_v5 }
 0x3b5   :  { %v554_v9 = vpop.eup %553 }
 0x3b6   :  { %v407_v10 = vmul.f32 %v554_v9, %v298_v46 }
 0x3b8   :  { %412 = vrot.lane.b32.xlu1 %v407_v10, %s623_s25 }
 0x3b9   :  { %v556_v13 = vpop.eup %555 }
 0x3ba   :  { %v409_v14 = vmul.f32 %v556_v13, %v299_v48 }
 0x3bc   :  { %421 = vrot.lane.b32.xlu1 %v304_v50, %s623_s25  ;;  %414 = vrot.lane.b32.xlu0 %v409_v14, %s623_s25 }
 0x3bf   :  { %v329_v17 = vpop.permute.xlu1 %328 }
 0x3c0   :  { %v332_v19 = vmul.f32 %v329_v17, %v319_v15  ;;  %423 = vrot.lane.b32.xlu0 %v305_v61, %s623_s25 }
 0x3c2   :  { %v335_v20 = vmul.f32 1.442695, %v332_v19 }
 0x3c4   :  { %v352_v23 = vpop.permute.xlu1 %351  ;;  %557 = vpow2.f32 %v335_v20 }
 0x3c5   :  { %v359_v24 = vmul.f32 %v352_v23, %v319_v15  ;;  %559 = vpow2.f32 %v333_v21 }
 0x3c6   :  { %561 = vpow2.f32 %v363_v22 }
 0x3c7   :  { %v361_v25 = vmul.f32 1.442695, %v359_v24 }
 0x3c9   :  { %563 = vpow2.f32 %v361_v25  ;;  %v340_v26 = vpop.permute.xlu1 %339 }
 0x3cd   :  { %v345_v27 = vpop.permute.xlu1 %344 }
 0x3ce   :  { %v558_v28 = vpop.eup %557 }
 0x3cf   :  { %v560_v29 = vpop.eup %559  ;;  %v348_v33 = vmul.f32 %v558_v28, %v345_v27 }
 0x3d0   :  { %v562_v30 = vpop.eup %561  ;;  %v347_v35 = vmul.f32 %v560_v29, %v340_v26 }
 0x3d2   :  { %v373_v31 = vpop.permute.xlu1 %372 }
 0x3d3   :  { %v564_v32 = vpop.eup %563  ;;  %v376_v34 = vmul.f32 %v562_v30, %v373_v31 }
 0x3d4   :  { %v375_v36 = vmul.f32 %v564_v32, %v368_v2 }
 0x3d5   :  { %v378_v37 = vadd.f32 %v376_v34, %v348_v33 }
 0x3d6   :  { %v377_v38 = vadd.f32 %v375_v36, %v347_v35  ;;  %v390_v39 = vpop.permute.xlu1 %389 }
 0x3d7   :  { %380 = vst.msk [vmem:[#allocation5 + $0x8] sm:$0xff] %vm68_vm1, %v378_v37 }
 0x3d8   :  { %396 = vst.msk [vmem:[%s788_s9] sm:$0xff] %vm395_vm3, %v390_v39 }
 0x3d9   :  { %379 = vst.msk [vmem:[#allocation5] sm:$0xff] %vm68_vm1, %v377_v38 }
 0x3da   :  { %598 = shalt.err (!%p595_p12)
}
 0x3db   :  { %s599_s29 = scalar_lea.hbm %s787_s8, 256 }
 0x3dc   :  { %p600_p13 = scmp.ne.s32.totalorder %s787_s8, %s599_s29  ;;  %p603_p0 = scmp.lt.u32.totalorder %s599_s29, %s787_s8 }
 0x3de   :  { %p605_p1 = pnand %p603_p0, %p600_p13 }
 0x3e0   :  { %608 = shalt.err (!%p605_p1)
}
 0x3e1   :  { %s625_s13 = smov 128   ;;  %s626_s4 = smov 8   ;;  %vm418_vm4 = vcmask 15368   ;;  %vm427_vm5 = vcmask 23568   ;;  %vm430_vm6 = vcmask 31768  }
 0x3e2   :  { %444 = dma.vmem_to_hbm [thread:$0]  %s439_s26, 256, %s787_s8, [#allocation4], %s625_s13, %s625_s13, %s626_s4  }
 0x42a   :  { %v413_v40 = vpop.permute.xlu1 %412 }
 0x42b   :  { %419 = vst.msk [vmem:[%s788_s9] sm:$0xff] %vm418_vm4, %v413_v40 }
 0x42e   :  { %v422_v41 = vpop.permute.xlu1 %421  ;;  %v415_v42 = vpop.permute.xlu0 %414 }
 0x42f   :  { %428 = vst.msk [vmem:[%s788_s9] sm:$0xff] %vm427_vm5, %v422_v41 }
 0x430   :  { %420 = vst.msk [vmem:[%s788_s9 + $0x8] sm:$0xff] %vm418_vm4, %v415_v42 }
 0x431   :  { %431 = vst.msk [vmem:[%s788_s9] sm:$0xff] %vm430_vm6, %v728_v56 }
 0x432   :  { %v424_v43 = vpop.permute.xlu0 %423 }
 0x433   :  { %429 = vst.msk [vmem:[%s788_s9 + $0x8] sm:$0xff] %vm427_vm5, %v424_v43 }
 0x434   :  { %432 = vst.msk [vmem:[%s788_s9 + $0x8] sm:$0xff] %vm430_vm6, %v731_v59 }
 0x435   :  { %611 = dma.done.wait [#allocation4], 256  }
 0x436   :  { %612 = vsyncadd [#allocation4], 4294967040 }
 0x437   :  { %452 = vsyncpa [#allocation3], 1 }
 0x438   :  { %453 = vsyncpa [#allocation4], 1 }

</bundles_post_ra>
